<compile_context>
chip_gen: v6e
topology: v6e:2x2x1
jax: 0.10.0
libtpu: 0.0.40
codegen_flags: <defaults>
</compile_context>

<pallas_src>
import functools

import jax
import jax.numpy as jnp
from jax.experimental import pallas as pl
from jax.experimental.pallas import tpu as pltpu


# ------------------------------ fast path ---------------------------------- #

def _single_pass_kernel(x_ref, w1_ref, w2_ref, o_ref):
    # x_ref: (B, C, HW)   w1_ref: (C, Cr)   w2_ref: (Cr, C)
    x = x_ref[...]                                    # input dtype, no f32 copy
    B = x.shape[0]
    inv_hw = 1.0 / x.shape[-1]

    # Adaptive avg / max pool to 1x1, f32 accumulation, keepdims to stay
    # sublane-major for the later broadcast.
    avg = jnp.sum(x, axis=-1, keepdims=True, dtype=jnp.float32) * inv_hw
    mx = jnp.max(x, axis=-1, keepdims=True).astype(jnp.float32)   # (B, C, 1)

    # Shared MLP: stack avg & max so both passes use a single matmul pair.
    pooled = jnp.concatenate([avg[..., 0], mx[..., 0]], axis=0)   # (2B, C)
    h = jnp.maximum(
        jnp.dot(pooled, w1_ref[...], preferred_element_type=jnp.float32), 0.0)
    feats = jnp.dot(h, w2_ref[...], preferred_element_type=jnp.float32)
    gate = jax.nn.sigmoid(feats[:B] + feats[B:])[:, :, None]      # (B, C, 1)

    # Multiply in the input dtype (no-op cast for f32 inputs).
    o_ref[...] = (x * gate.astype(x.dtype)).astype(o_ref.dtype)


# ------------------------- tiled reduction phase ---------------------------- #

def _pool_gate_kernel(x_ref, w1_ref, w2_ref, gate_ref, sum_sc, max_sc,
                      *, hw_total, tile_hw, needs_mask):
    # x_ref: (1, C, tile_hw)   gate_ref: (1, C, 1)   scratch: (1, C, 1) f32
    hw_i = pl.program_id(1)

    @pl.when(hw_i == 0)
    def _init():
        sum_sc[...] = jnp.zeros_like(sum_sc)
        max_sc[...] = jnp.full_like(max_sc, -jnp.inf)

    x = x_ref[...]
    if needs_mask:
        # Last tile may run past HW: mask padded lanes (0 for sum, -inf for max).
        lane = hw_i * tile_hw + jax.lax.broadcasted_iota(jnp.int32, x.shape, 2)
        valid = lane < hw_total
        x_sum = jnp.where(valid, x, 0)
        x_max = jnp.where(valid, x, -jnp.inf)
    else:
        x_sum = x
        x_max = x

    sum_sc[...] += jnp.sum(x_sum, axis=-1, keepdims=True, dtype=jnp.float32)
    max_sc[...] = jnp.maximum(
        max_sc[...], jnp.max(x_max, axis=-1, keepdims=True).astype(jnp.float32))

    @pl.when(hw_i == pl.num_programs(1) - 1)
    def _finalize():
        avg = sum_sc[...] * (1.0 / hw_total)                      # (1, C, 1)
        # Fused MLP over stacked [avg; max] rows.
        pooled = jnp.concatenate([avg[..., 0], max_sc[...][..., 0]], axis=0)
        h = jnp.maximum(
            jnp.dot(pooled, w1_ref[...], preferred_element_type=jnp.float32),
            0.0)
        feats = jnp.dot(h, w2_ref[...], preferred_element_type=jnp.float32)
        gate = jax.nn.sigmoid(feats[0:1] + feats[1:2])            # (1, C)
        gate_ref[...] = gate[:, :, None]                          # (1, C, 1)


# --------------------------- tiled scale phase ------------------------------ #

def _scale_kernel(gate_ref, x_ref, o_ref):
    # gate_ref: (1, C, 1) f32   x_ref / o_ref: (1, C, tile_hw)
    g = gate_ref[...].astype(x_ref.dtype)      # lane broadcast, no relayout
    o_ref[...] = (x_ref[...] * g).astype(o_ref.dtype)


# -------------------------------- wrapper ----------------------------------- #

def channel_attention(x, w1, w2, *, tile_hw=1024,
                      single_pass_max_bytes=2 * 1024 * 1024):
    """CBAM channel attention.

    x : (B, C, H, W) NCHW.
    w1: (C, C//ratio)  = Linear1.weight.T (bias-free)
    w2: (C//ratio, C)  = Linear2.weight.T (bias-free)
    """
    B, C, H, W = x.shape
    HW = H * W
    x3 = x.reshape(B, C, HW)

    x_bytes = B * C * HW * x.dtype.itemsize

    if x_bytes <= single_pass_max_bytes:
        # Small activations: whole tensor fits comfortably in VMEM even with
        # double buffering -> single fused pass (x read once, written once).
        out3 = pl.pallas_call(
            _single_pass_kernel,
            out_shape=jax.ShapeDtypeStruct((B, C, HW), x.dtype),
            grid=(1,),
            in_specs=[
                pl.BlockSpec((B, C, HW), lambda i: (0, 0, 0)),
                pl.BlockSpec(w1.shape, lambda i: (0, 0)),
                pl.BlockSpec(w2.shape, lambda i: (0, 0)),
            ],
            out_specs=pl.BlockSpec((B, C, HW), lambda i: (0, 0, 0)),
            compiler_params=pltpu.CompilerParams(
                dimension_semantics=("arbitrary",)),
        )(x3, w1, w2)
        return out3.reshape(B, C, H, W)

    # General path: tiled, pipelined two-phase structure over (B, HW).
    thw = HW if HW <= tile_hw else tile_hw       # lane tile (multiple of 128)
    n_hw = pl.cdiv(HW, thw)
    needs_mask = (HW % thw) != 0

    # Phase 1: pooled sum/max reduction + MLP gate (reduction axis last).
    gate = pl.pallas_call(
        functools.partial(_pool_gate_kernel, hw_total=HW, tile_hw=thw,
                          needs_mask=needs_mask),
        out_shape=jax.ShapeDtypeStruct((B, C, 1), jnp.float32),
        grid=(B, n_hw),
        in_specs=[
            pl.BlockSpec((1, C, thw), lambda b, h: (b, 0, h)),
            pl.BlockSpec(w1.shape, lambda b, h: (0, 0)),
            pl.BlockSpec(w2.shape, lambda b, h: (0, 0)),
        ],
        out_specs=pl.BlockSpec((1, C, 1), lambda b, h: (b, 0, 0)),
        scratch_shapes=[pltpu.VMEM((1, C, 1), jnp.float32),
                        pltpu.VMEM((1, C, 1), jnp.float32)],
        compiler_params=pltpu.CompilerParams(
            dimension_semantics=("parallel", "arbitrary")),
    )(x3, w1, w2)

    # Phase 2: elementwise scaling, fully parallel grid (megacore on v7x),
    # lane-dense output tiles.
    out3 = pl.pallas_call(
        _scale_kernel,
        out_shape=jax.ShapeDtypeStruct((B, C, HW), x.dtype),
        grid=(B, n_hw),
        in_specs=[
            pl.BlockSpec((1, C, 1), lambda b, h: (b, 0, 0)),
            pl.BlockSpec((1, C, thw), lambda b, h: (b, 0, h)),
        ],
        out_specs=pl.BlockSpec((1, C, thw), lambda b, h: (b, 0, h)),
        compiler_params=pltpu.CompilerParams(
            dimension_semantics=("parallel", "parallel")),
    )(gate, x3)

    return out3.reshape(B, C, H, W)


# ------------------------------- reference ---------------------------------- #

def reference(x, w1, w2):
    xf = x.astype(jnp.float32)
    avg = jnp.mean(xf, axis=(2, 3))
    mx = jnp.max(xf, axis=(2, 3))

    def mlp(v):
        return jnp.maximum(v @ w1, 0.0) @ w2

    gate = jax.nn.sigmoid(mlp(avg) + mlp(mx))
    return xf * gate[:, :, None, None]


if __name__ == "__main__":
    # Shapes consistent with the module: ratio=8 => C divisible by 8.
    B, C, ratio = 2, 32, 8
    Cr = C // ratio

    key = jax.random.PRNGKey(0)
    kx, k1, k2, kx2 = jax.random.split(key, 4)

    # PyTorch Linear weight is (out, in); we store the transposed (in, out)
    # form used directly in the matmuls.
    w1 = jax.random.normal(k1, (C, Cr), dtype=jnp.float32) * 0.1
    w2 = jax.random.normal(k2, (Cr, C), dtype=jnp.float32) * 0.1

    # 1) Small shape -> fused single-pass fast path.
    x = jax.random.normal(kx, (B, C, 16, 16), dtype=jnp.float32)
    out = jax.block_until_ready(channel_attention(x, w1, w2))
    ref = reference(x, w1, w2)
    assert out.shape == x.shape
    assert jnp.allclose(out, ref, atol=1e-5, rtol=1e-5), "fast path mismatch"

    # 2) Same input forced through the tiled two-phase pipeline
    #    (HW = 256, evenly divided by 128-lane tiles).
    out_t = jax.block_until_ready(
        channel_attention(x, w1, w2, tile_hw=128, single_pass_max_bytes=0))
    assert jnp.allclose(out_t, ref, atol=1e-5, rtol=1e-5), "tiled path mismatch"

    # 3) Ragged spatial size (HW = 260, NOT a multiple of the 128-lane tile):
    #    exercises the masked tail-tile reduction.
    x2 = jax.random.normal(kx2, (B, C, 20, 13), dtype=jnp.float32)
    out_r = jax.block_until_ready(
        channel_attention(x2, w1, w2, tile_hw=128, single_pass_max_bytes=0))
    ref_r = reference(x2, w1, w2)
    assert jnp.allclose(out_r, ref_r, atol=1e-5, rtol=1e-5), "masked tile mismatch"

    print("KERNEL_OK")
</pallas_src>

<mosaic_0001>
module attributes {stable_mosaic.version = 11 : i64} {
  func.func @_single_pass_kernel(%arg0: i32, %arg1: memref<2x32x256xf32, #tpu.memory_space<vmem>>, %arg2: memref<32x4xf32, #tpu.memory_space<vmem>>, %arg3: memref<4x32xf32, #tpu.memory_space<vmem>>, %arg4: memref<2x32x256xf32, #tpu.memory_space<vmem>>) attributes {dimension_semantics = [#tpu.dimension_semantics<arbitrary>], iteration_bounds = array<i64: 1>, scalar_prefetch = 0 : i64, scratch_operands = 0 : i64, tpu.core_type = #tpu.core_type<tc>, window_params = [{pipeline_mode = #tpu.pipeline_mode<synchronous>, transform_indices = @transform_0, window_bounds = array<i64: 2, 32, 256>}, {pipeline_mode = #tpu.pipeline_mode<synchronous>, transform_indices = @transform_1, window_bounds = array<i64: 32, 4>}, {pipeline_mode = #tpu.pipeline_mode<synchronous>, transform_indices = @transform_2, window_bounds = array<i64: 4, 32>}, {pipeline_mode = #tpu.pipeline_mode<synchronous>, transform_indices = @transform_3, window_bounds = array<i64: 2, 32, 256>}]} {
    %c0 = arith.constant 0 : index
    %c0_0 = arith.constant 0 : index
    %c0_1 = arith.constant 0 : index
    %0 = vector.load %arg1[%c0, %c0_0, %c0_1] : memref<2x32x256xf32, #tpu.memory_space<vmem>>, vector<2x32x256xf32>
    %cst = arith.constant dense<0.000000e+00> : vector<2x32xf32>
    %1 = vector.multi_reduction <add>, %0, %cst [2] : vector<2x32x256xf32> to vector<2x32xf32>
    %2 = vector.shape_cast %1 : vector<2x32xf32> to vector<2x32x1xf32>
    %cst_2 = arith.constant 3.906250e-03 : f32
    %3 = vector.broadcast %cst_2 : f32 to vector<2x32x1xf32>
    %4 = arith.mulf %2, %3 : vector<2x32x1xf32>
    %cst_3 = arith.constant dense<0xFF800000> : vector<2x32xf32>
    %5 = vector.multi_reduction <maximumf>, %0, %cst_3 [2] : vector<2x32x256xf32> to vector<2x32xf32>
    %6 = vector.shape_cast %5 : vector<2x32xf32> to vector<2x32x1xf32>
    %7 = vector.shape_cast %4 : vector<2x32x1xf32> to vector<2x32xf32>
    %8 = vector.shape_cast %6 : vector<2x32x1xf32> to vector<2x32xf32>
    %9 = tpu.concatenate %7, %8 in 0 : vector<2x32xf32>, vector<2x32xf32> -> vector<4x32xf32>
    %c0_4 = arith.constant 0 : index
    %c0_5 = arith.constant 0 : index
    %10 = vector.load %arg2[%c0_4, %c0_5] : memref<32x4xf32, #tpu.memory_space<vmem>>, vector<32x4xf32>
    %cst_6 = arith.constant dense<0.000000e+00> : vector<4x4xf32>
    %11 = tpu.matmul %9, %10, %cst_6 {dimension_numbers = #tpu.dot_dimension_numbers<[1], [0], [0], [1], [0, 0, 1, 1], [], []>} : vector<4x32xf32>, vector<32x4xf32>, vector<4x4xf32> -> vector<4x4xf32>
    %cst_7 = arith.constant 0.000000e+00 : f32
    %12 = vector.broadcast %cst_7 : f32 to vector<4x4xf32>
    %13 = arith.maximumf %11, %12 : vector<4x4xf32>
    %c0_8 = arith.constant 0 : index
    %c0_9 = arith.constant 0 : index
    %14 = vector.load %arg3[%c0_8, %c0_9] : memref<4x32xf32, #tpu.memory_space<vmem>>, vector<4x32xf32>
    %cst_10 = arith.constant dense<0.000000e+00> : vector<4x32xf32>
    %15 = tpu.matmul %13, %14, %cst_10 {dimension_numbers = #tpu.dot_dimension_numbers<[1], [0], [0], [1], [0, 0, 1, 1], [], []>} : vector<4x4xf32>, vector<4x32xf32>, vector<4x32xf32> -> vector<4x32xf32>
    %16 = vector.extract_strided_slice %15 {offsets = [0, 0], sizes = [2, 32], strides = [1, 1]} : vector<4x32xf32> to vector<2x32xf32>
    %17 = vector.extract_strided_slice %15 {offsets = [2, 0], sizes = [2, 32], strides = [1, 1]} : vector<4x32xf32> to vector<2x32xf32>
    %18 = arith.addf %16, %17 : vector<2x32xf32>
    %19 = arith.negf %18 : vector<2x32xf32>
    %20 = math.exp %19 : vector<2x32xf32>
    %cst_11 = arith.constant 1.000000e+00 : f32
    %21 = vector.broadcast %cst_11 : f32 to vector<2x32xf32>
    %22 = arith.addf %21, %20 : vector<2x32xf32>
    %23 = arith.divf %21, %22 : vector<2x32xf32>
    %24 = vector.shape_cast %23 : vector<2x32xf32> to vector<2x32x1xf32>
    %25 = vector.broadcast %24 : vector<2x32x1xf32> to vector<2x32x256xf32>
    %26 = arith.mulf %0, %25 : vector<2x32x256xf32>
    %c0_12 = arith.constant 0 : index
    %c0_13 = arith.constant 0 : index
    %c0_14 = arith.constant 0 : index
    %27 = vector.load %arg4[%c0_12, %c0_13, %c0_14] : memref<2x32x256xf32, #tpu.memory_space<vmem>>, vector<2x32x256xf32>
    tpu.vector_store %arg4[%c0_12, %c0_13, %c0_14], %26 {strides = array<i32>} : memref<2x32x256xf32, #tpu.memory_space<vmem>>, vector<2x32x256xf32>,
    return
  }
  func.func @transform_0(%arg0: i32) -> (i32, i32, i32) {
    %c0_i32 = arith.constant 0 : i32
    %c0_i32_0 = arith.constant 0 : i32
    %c0_i32_1 = arith.constant 0 : i32
    %c0_i32_2 = arith.constant 0 : i32
    return %c0_i32, %c0_i32_0, %c0_i32_1 : i32, i32, i32
  }
  func.func @transform_1(%arg0: i32) -> (i32, i32) {
    %c0_i32 = arith.constant 0 : i32
    %c0_i32_0 = arith.constant 0 : i32
    %c0_i32_1 = arith.constant 0 : i32
    return %c0_i32, %c0_i32_0 : i32, i32
  }
  func.func @transform_2(%arg0: i32) -> (i32, i32) {
    %c0_i32 = arith.constant 0 : i32
    %c0_i32_0 = arith.constant 0 : i32
    %c0_i32_1 = arith.constant 0 : i32
    return %c0_i32, %c0_i32_0 : i32, i32
  }
  func.func @transform_3(%arg0: i32) -> (i32, i32, i32) {
    %c0_i32 = arith.constant 0 : i32
    %c0_i32_0 = arith.constant 0 : i32
    %c0_i32_1 = arith.constant 0 : i32
    %c0_i32_2 = arith.constant 0 : i32
    return %c0_i32, %c0_i32_0, %c0_i32_1 : i32, i32, i32
  }
}

</mosaic_0001>

<bundles_post_ra>
// kernel: tpu_custom_call.1
= control target key start
LH: loop header
LB: loop body
LE: loop exit
PB: predicated region body
PF: predicated region fallthrough
CT: control target
= control target key end

     0   :  { %8 = vsyncpa [#allocation3], 0  ;;  %s700_s0 = inlined_call_operand.hbm [shape: f32[2,32,256], index: 0, kind: input, shape index: {}]   ;;  %s701_s1 = inlined_call_operand.vmem [shape: f32[32,4], index: 1, kind: input, shape index: {}]   ;;  %s702_s2 = inlined_call_operand.vmem [shape: f32[4,32], index: 2, kind: input, shape index: {}]   ;;  %s703_s3 = inlined_call_operand.hbm [shape: f32[2,32,256], index: 3, kind: output, shape index: {}]  }
   0x1   :  { %9 = vsyncpa [#allocation4], 0  ;;  %s545_s12 = smov [#allocation2]  }
   0x2   :  { %s15_s13 = sshll.u32 %s545_s12, 4  ;;  %s16_s13 = int_to_ptr.vmem [resolvable:$true] %s15_s13 }
   0x3   :  { %s509_s14 = scalar_lea.vmem %s16_s13, 2048  ;;  %p514_p1 = scmp.lt.s32.totalorder %s16_s13, %s16_s13 }
   0x4   :  { %p510_p0 = scmp.ne.s32.totalorder %s16_s13, %s509_s14  ;;  %p515_p2 = scmp.lt.s32.totalorder %s509_s14, %s509_s14 }
   0x6   :  { %p516_p3 = por %p515_p2, %p514_p1 }
   0x8   :  { %p517_p4 = pnand %p516_p3, %p510_p0 }
   0xa   :  { %520 = shalt.err (!%p517_p4)
}
   0xb   :  { %s546_s15 = smov 256   ;;  %s547_s16 = smov 16  }
   0xc   :  { %21 = dma.hbm_to_vmem [thread:$0]  %s700_s0, 2048, %s16_s13, [#allocation3], %s546_s15, %s546_s15, %s547_s16  }
   0xd   :  { %541 = dma.done.wait [#allocation3], 2048  }
   0xe   :  { %542 = vsyncadd [#allocation3], 4294965248  ;;  %v577_v0 = vld [vmem:[#allocation2 + $0x40] sm:$0xff]  ;;  %v579_v1 = vld [vmem:[#allocation2 + $0x48] sm:$0xff]  ;;  %v548_v32 = vmov 0.0   ;;  %vm549_vm0 = vmmov 0   ;;  %v109_v42 = vlaneseq }
   0xf   :  { %v581_v2 = vld [vmem:[#allocation2] sm:$0xff]  ;;  %v57_v3 = vadd.f32 %v579_v1, %v577_v0  ;;  %v585_v4 = vld [vmem:[#allocation2 + $0x8] sm:$0xff]  ;;  %v587_v5 = vld [vmem:[#allocation2 + $0x50] sm:$0xff]  ;;  %v89_v27 = vmax.f32 %v577_v0, %v579_v1  ;;  %475 = vmatprep.subr.mxu0 %v548_v32  ;;  %486 = vmatprep.subr.mxu1 %v548_v32  ;;  %vm120_vm1 = vcmask 130112   ;;  %vm127_vm2 = vcmask 195712  }
  0x10   :  { %v589_v6 = vld [vmem:[#allocation2 + $0x58] sm:$0xff]  ;;  %v45_v7 = vadd.f32 %v585_v4, %v581_v2  ;;  %v593_v8 = vld [vmem:[#allocation2 + $0x10] sm:$0xff]  ;;  %v601_v12 = vld [vmem:[#allocation2 + $0x60] sm:$0xff]  ;;  %v77_v25 = vmax.f32 %v581_v2, %v585_v4  ;;  %483 = vmatprep.mubr.msk.f32.mxu0 %vm549_vm0, %v548_v32  ;;  %488 = vmatprep.mubr.msk.f32.mxu1 %vm549_vm0, %v548_v32  ;;  %v110_v45 = vand.u32 127, %v109_v42  ;;  %v653_v47 = vshrl.u32 %v109_v42, 7 }
  0x11   :  { %v595_v9 = vld [vmem:[#allocation2 + $0x18] sm:$0xff]  ;;  %58 = vadd.xlane.f32.xlu1 %v57_v3  ;;  %v60_v10 = vadd.f32 %v589_v6, %v587_v5  ;;  %v603_v13 = vld [vmem:[#allocation2 + $0x68] sm:$0xff]  ;;  %v605_v14 = vld [vmem:[#allocation2 + $0x20] sm:$0xff]  ;;  %v92_v26 = vmax.f32 %v587_v5, %v589_v6  ;;  %vm134_vm3 = vcmask 261312   ;;  %vm155_vm4 = vcmask 1041409  }
  0x12   :  { %46 = vadd.xlane.f32.xlu0 %v45_v7  ;;  %v48_v11 = vadd.f32 %v595_v9, %v593_v8  ;;  %v607_v15 = vld [vmem:[#allocation2 + $0x28] sm:$0xff]  ;;  %v63_v16 = vadd.f32 %v603_v13, %v601_v12  ;;  %v613_v18 = vld [vmem:[#allocation2 + $0x70] sm:$0xff]  ;;  %v615_v19 = vld [vmem:[#allocation2 + $0x78] sm:$0xff]  ;;  %v80_v24 = vmax.f32 %v593_v8, %v595_v9  ;;  %v95_v28 = vmax.f32 %v601_v12, %v603_v13 }
  0x13   :  { %v51_v17 = vadd.f32 %v607_v15, %v605_v14  ;;  %v617_v20 = vld [vmem:[#allocation2 + $0x30] sm:$0xff]  ;;  %v619_v21 = vld [vmem:[#allocation2 + $0x38] sm:$0xff]  ;;  %v66_v22 = vadd.f32 %v615_v19, %v613_v18  ;;  %v83_v29 = vmax.f32 %v605_v14, %v607_v15  ;;  %v98_v30 = vmax.f32 %v613_v18, %v615_v19  ;;  %v210_v35 = vld [vmem:[%s701_s1 + $0x8] sm:$0xff] }
  0x14   :  { %v54_v23 = vadd.f32 %v619_v21, %v617_v20  ;;  %v86_v31 = vmax.f32 %v617_v20, %v619_v21  ;;  %v212_v33 = vld [vmem:[%s701_s1 + $0x18] sm:$0xff]  ;;  %v211_v34 = vld [vmem:[%s701_s1 + $0x10] sm:$0xff]  ;;  %v209_v36 = vld [vmem:[%s701_s1] sm:$0xff]  ;;  %v115_v48 = vadd.s32 4294967288, %v110_v45  ;;  %v122_v49 = vadd.s32 4294967280, %v110_v45 }
  0x15   :  { %61 = vadd.xlane.f32.xlu1 %v60_v10  ;;  %476 = vmatpush3.msra.mxu0 %v212_v33  ;;  %v129_v51 = vadd.s32 4294967272, %v110_v45  ;;  %v113_v53 = vsub.s32 %v110_v45, %v653_v47  ;;  %vm204_vm5 = vcmask 1043459   ;;  %vm207_vm6 = vcmask 1041408  }
  0x16   :  { %49 = vadd.xlane.f32.xlu0 %v48_v11  ;;  %477 = vmatprep.subr.mxu0 %v548_v32  ;;  %v118_v54 = vsub.s32 %v115_v48, %v653_v47  ;;  %v125_v56 = vsub.s32 %v122_v49, %v653_v47  ;;  %vm213_vm7 = vcmask 261120   ;;  %vm293_vm8 = vcmask 1043456  }
  0x17   :  { %478 = vmatpush3.msra.mxu0 %v211_v34  ;;  %v132_v63 = vsub.s32 %v129_v51, %v653_v47  ;;  %vm289_vm9 = vcmask 31744  }
  0x18   :  { %479 = vmatprep.subr.mxu0 %v548_v32 }
  0x19   :  { %64 = vadd.xlane.f32.xlu1 %v63_v16  ;;  %480 = vmatpush3.msra.mxu0 %v210_v35 }
  0x1a   :  { %52 = vadd.xlane.f32.xlu0 %v51_v17  ;;  %481 = vmatprep.subr.mxu0 %v548_v32 }
  0x1b   :  { %482 = vmatpush3.msra.mxu0 %v209_v36 }
  0x1d   :  { %67 = vadd.xlane.f32.xlu1 %v66_v22 }
  0x1e   :  { %55 = vadd.xlane.f32.xlu0 %v54_v23 }
  0x21   :  { %81 = vmax.xlane.f32.xlu1 %v80_v24 }
  0x22   :  { %78 = vmax.xlane.f32.xlu0 %v77_v25 }
  0x25   :  { %93 = vmax.xlane.f32.xlu1 %v92_v26 }
  0x26   :  { %90 = vmax.xlane.f32.xlu0 %v89_v27 }
  0x29   :  { %96 = vmax.xlane.f32.xlu1 %v95_v28 }
  0x2a   :  { %84 = vmax.xlane.f32.xlu0 %v83_v29 }
  0x2d   :  { %99 = vmax.xlane.f32.xlu1 %v98_v30 }
  0x2e   :  { %87 = vmax.xlane.f32.xlu0 %v86_v31 }
  0x9a   :  { %v59_v37 = vpop.xlane.xlu1 %58 }
  0x9b   :  { %v47_v38 = vpop.xlane.xlu0 %46  ;;  %v73_v57 = vmul.f32 0.00390625, %v59_v37 }
  0x9c   :  { %v69_v58 = vmul.f32 0.00390625, %v47_v38 }
  0x9d   :  { %v139_v16 = vrot.slane %v73_v57, %v113_v53 }
  0x9e   :  { %v62_v39 = vpop.xlane.xlu1 %61  ;;  %v114_v17 = vrot.slane %v69_v58, %v113_v53 }
  0x9f   :  { %v50_v40 = vpop.xlane.xlu0 %49  ;;  %v74_v55 = vmul.f32 0.00390625, %v62_v39 }
  0xa0   :  { %v70_v59 = vmul.f32 0.00390625, %v50_v40 }
  0xa1   :  { %v143_v11 = vrot.slane %v74_v55, %v118_v54  ;;  %v288_v55 = vld [vmem:[%s702_s2] sm:$0xf]  ;;  %s550_s2 = smov [#allocation5]  }
  0xa2   :  { %v65_v41 = vpop.xlane.xlu1 %64  ;;  %v119_v22 = vrot.slane %v70_v59, %v118_v54  ;;  %487 = vmatpush3.msk.msra.mxu1 %vm293_vm8, %v288_v55  ;;  %s452_s27 = sshll.u32 %s550_s2, 4  ;;  %s453_s27 = int_to_ptr.vmem [resolvable:$true] %s452_s27 }
  0xa3   :  { %v53_v43 = vpop.xlane.xlu0 %52  ;;  %v75_v60 = vmul.f32 0.00390625, %v65_v41  ;;  %v144_v34 = vsel %vm120_vm1, %v143_v11, %v139_v16  ;;  %s521_s28 = scalar_lea.vmem %s453_s27, 2048  ;;  %p526_p6 = scmp.lt.s32.totalorder %s453_s27, %s453_s27 }
  0xa4   :  { %v71_v62 = vmul.f32 0.00390625, %v53_v43  ;;  %v121_v36 = vsel %vm120_vm1, %v119_v22, %v114_v17  ;;  %v398_v17 = vsub.s32 1, %v653_v47  ;;  %p522_p5 = scmp.ne.s32.totalorder %s453_s27, %s521_s28  ;;  %p527_p7 = scmp.lt.s32.totalorder %s521_s28, %s521_s28 }
  0xa5   :  { %v148_v23 = vrot.slane %v75_v60, %v125_v56 }
  0xa6   :  { %v68_v44 = vpop.xlane.xlu1 %67  ;;  %v126_v25 = vrot.slane %v71_v62, %v125_v56  ;;  %p528_p8 = por %p527_p7, %p526_p6 }
  0xa7   :  { %v56_v46 = vpop.xlane.xlu0 %55  ;;  %v76_v3 = vmul.f32 0.00390625, %v68_v44  ;;  %v149_v37 = vsel %vm127_vm2, %v148_v23, %v144_v34 }
  0xa8   :  { %v72_v10 = vmul.f32 0.00390625, %v56_v46  ;;  %v128_v39 = vsel %vm127_vm2, %v126_v25, %v121_v36  ;;  %p529_p9 = pnand %p528_p8, %p522_p5 }
  0xa9   :  { %v153_v26 = vrot.slane %v76_v3, %v132_v63 }
  0xaa   :  { %v82_v50 = vpop.xlane.xlu1 %81  ;;  %v133_v30 = vrot.slane %v72_v10, %v132_v63  ;;  %v379_v10 = vsub.s32 0, %v653_v47 }
  0xab   :  { %v79_v52 = vpop.xlane.xlu0 %78  ;;  %v173_v31 = vrot.slane %v82_v50, %v118_v54  ;;  %v154_v40 = vsel %vm134_vm3, %v153_v26, %v149_v37 }
  0xac   :  { %v169_v32 = vrot.slane %v79_v52, %v113_v53  ;;  %v135_v44 = vsel %vm134_vm3, %v133_v30, %v128_v39 }
  0xad   :  { %v156_v52 = vsel %vm155_vm4, %v154_v40, %v135_v44 }
  0xae   :  { %v94_v61 = vpop.xlane.xlu1 %93  ;;  %v174_v45 = vsel %vm120_vm1, %v173_v31, %v169_v32 }
  0xaf   :  { %v91_v7 = vpop.xlane.xlu0 %90  ;;  %v192_v27 = vrot.slane %v94_v61, %v118_v54 }
  0xb0   :  { %v188_v28 = vrot.slane %v91_v7, %v113_v53 }
  0xb2   :  { %v97_v24 = vpop.xlane.xlu1 %96  ;;  %v193_v41 = vsel %vm120_vm1, %v192_v27, %v188_v28 }
  0xb3   :  { %v85_v29 = vpop.xlane.xlu0 %84  ;;  %v197_v33 = vrot.slane %v97_v24, %v125_v56 }
  0xb4   :  { %v178_v35 = vrot.slane %v85_v29, %v125_v56 }
  0xb5   :  { %v198_v46 = vsel %vm127_vm2, %v197_v33, %v193_v41 }
  0xb6   :  { %v100_v38 = vpop.xlane.xlu1 %99  ;;  %v179_v49 = vsel %vm127_vm2, %v178_v35, %v174_v45 }
  0xb7   :  { %v202_v42 = vrot.slane %v100_v38, %v132_v63  ;;  %v88_v43 = vpop.xlane.xlu0 %87 }
  0xb8   :  { %v183_v48 = vrot.slane %v88_v43, %v132_v63 }
  0xb9   :  { %v203_v50 = vsel %vm134_vm3, %v202_v42, %v198_v46 }
  0xba   :  { %v184_v51 = vsel %vm134_vm3, %v183_v48, %v179_v49 }
  0xbb   :  { %v205_v53 = vsel %vm204_vm5, %v203_v50, %v184_v51 }
  0xbc   :  { %v208_v54 = vsel %vm207_vm6, %v156_v52, %v205_v53 }
  0xbd   :  { %484 = vmatmul.mubr.msk.f32.vlgmr.msra.gmra.mxu0 %vm213_vm7, %v208_v54 }
 0x17d   :  { %v283_v56 = vpop.f32.mrf.mxu0 }
 0x17e   :  { %v287_v57 = vmax.f32 %v283_v56, 0.0 }
 0x17f   :  { %v485_v58 = vpop.f32.mrf.mxu0 }
 0x180   :  { %489 = vmatmul.mubr.msk.f32.vlgmr.msra.gmra.mxu1 %vm289_vm9, %v287_v57 }
 0x240   :  { %v363_v59 = vpop.f32.mrf.mxu1 }
 0x241   :  { %v368_v60 = vrot.slane %v363_v59, 2 }
 0x242   :  { %v490_v61 = vpop.f32.mrf.mxu1 }
 0x243   :  { %v370_v62 = vadd.f32 %v368_v60, %v363_v59 }
 0x245   :  { %v467_v63 = vmul.f32 -1.442695, %v370_v62 }
 0x247   :  { %497 = vpow2.f32 %v467_v63 }
 0x254   :  { %v498_v3 = vpop.eup %497 }
 0x255   :  { %v374_v7 = vadd.f32 1.0, %v498_v3 }
 0x257   :  { %499 = vrcp.f32 %v374_v7 }
 0x264   :  { %v500_v11 = vpop.eup %499 }
 0x265   :  { %v380_v16 = vrot.slane %v500_v11, %v379_v10  ;;  %v399_v22 = vrot.slane %v500_v11, %v398_v17 }
 0x267   :  { %386 = vbcast.lane.b32.xlu1 %v380_v16, 264  ;;  %382 = vbcast.lane.b32.xlu0 %v380_v16, 256 }
 0x26b   :  { %390 = vbcast.lane.b32.xlu1 %v380_v16, 272  ;;  %401 = vbcast.lane.b32.xlu0 %v399_v22, 256 }
 0x26f   :  { %394 = vbcast.lane.b32.xlu1 %v380_v16, 280  ;;  %409 = vbcast.lane.b32.xlu0 %v399_v22, 272 }
 0x273   :  { %405 = vbcast.lane.b32.xlu1 %v399_v22, 264 }
 0x277   :  { %413 = vbcast.lane.b32.xlu1 %v399_v22, 280 }
 0x2d9   :  { %v387_v23 = vpop.permute.xlu1 %386  ;;  %v383_v24 = vpop.permute.xlu0 %382 }
 0x2da   :  { %v417_v25 = vmul.f32 %v387_v23, %v593_v8  ;;  %v418_v26 = vmul.f32 %v387_v23, %v595_v9  ;;  %v415_v27 = vmul.f32 %v383_v24, %v581_v2  ;;  %v416_v28 = vmul.f32 %v383_v24, %v585_v4 }
 0x2dc   :  { %433 = vst [vmem:[#allocation5 + $0x10] sm:$0xff] %v417_v25  ;;  %434 = vst [vmem:[#allocation5 + $0x18] sm:$0xff] %v418_v26 }
 0x2dd   :  { %431 = vst [vmem:[#allocation5] sm:$0xff] %v415_v27  ;;  %432 = vst [vmem:[#allocation5 + $0x8] sm:$0xff] %v416_v28  ;;  %v391_v47 = vpop.permute.xlu1 %390  ;;  %v402_v29 = vpop.permute.xlu0 %401 }
 0x2de   :  { %v419_v30 = vmul.f32 %v391_v47, %v605_v14  ;;  %v420_v31 = vmul.f32 %v391_v47, %v607_v15  ;;  %v423_v32 = vmul.f32 %v402_v29, %v577_v0  ;;  %v424_v8 = vmul.f32 %v402_v29, %v579_v1 }
 0x2e0   :  { %435 = vst [vmem:[#allocation5 + $0x20] sm:$0xff] %v419_v30  ;;  %436 = vst [vmem:[#allocation5 + $0x28] sm:$0xff] %v420_v31 }
 0x2e1   :  { %439 = vst [vmem:[#allocation5 + $0x40] sm:$0xff] %v423_v32  ;;  %440 = vst [vmem:[#allocation5 + $0x48] sm:$0xff] %v424_v8  ;;  %v395_v2 = vpop.permute.xlu1 %394  ;;  %v410_v4 = vpop.permute.xlu0 %409 }
 0x2e2   :  { %v421_v9 = vmul.f32 %v395_v2, %v617_v20  ;;  %v422_v33 = vmul.f32 %v395_v2, %v619_v21  ;;  %v427_v34 = vmul.f32 %v410_v4, %v601_v12  ;;  %v428_v14 = vmul.f32 %v410_v4, %v603_v13 }
 0x2e4   :  { %437 = vst [vmem:[#allocation5 + $0x30] sm:$0xff] %v421_v9  ;;  %438 = vst [vmem:[#allocation5 + $0x38] sm:$0xff] %v422_v33 }
 0x2e5   :  { %443 = vst [vmem:[#allocation5 + $0x60] sm:$0xff] %v427_v34  ;;  %444 = vst [vmem:[#allocation5 + $0x68] sm:$0xff] %v428_v14  ;;  %v406_v0 = vpop.permute.xlu1 %405 }
 0x2e6   :  { %v425_v1 = vmul.f32 %v406_v0, %v587_v5  ;;  %v426_v15 = vmul.f32 %v406_v0, %v589_v6 }
 0x2e8   :  { %441 = vst [vmem:[#allocation5 + $0x50] sm:$0xff] %v425_v1  ;;  %442 = vst [vmem:[#allocation5 + $0x58] sm:$0xff] %v426_v15 }
 0x2e9   :  { %v414_v20 = vpop.permute.xlu1 %413 }
 0x2ea   :  { %v429_v21 = vmul.f32 %v414_v20, %v613_v18  ;;  %v430_v12 = vmul.f32 %v414_v20, %v615_v19 }
 0x2ec   :  { %445 = vst [vmem:[#allocation5 + $0x70] sm:$0xff] %v429_v21  ;;  %446 = vst [vmem:[#allocation5 + $0x78] sm:$0xff] %v430_v12 }
 0x2ed   :  { %532 = shalt.err (!%p529_p9)
}
 0x2ee   :  { %458 = dma.vmem_to_hbm [thread:$0]  %s453_s27, 2048, %s703_s3, [#allocation4], %s546_s15, %s546_s15, %s547_s16  }
 0x2ef   :  { %543 = dma.done.wait [#allocation4], 2048  }
 0x2f0   :  { %544 = vsyncadd [#allocation4], 4294965248 }
 0x2f1   :  { %462 = vsyncpa [#allocation3], 1 }
 0x2f2   :  { %463 = vsyncpa [#allocation4], 1 }

</bundles_post_ra>
